<compile_context>
chip_gen: v5e
topology: v5e:2x2
jax: 0.10.0
libtpu: 0.0.40
codegen_flags: <defaults>
</compile_context>

<pallas_src>
import jax
import jax.numpy as jnp
from jax.experimental import pallas as pl
from jax.experimental.pallas import tpu as pltpu

CLIP_VAL = 5.0
FORGET_BIAS = 1.0
LANE = 128
SUBLANE = 8


def _round_up(x, m):
    return (x + m - 1) // m * m


# ---------------------------------------------------------------------------
# kernel: one generator time step per grid iteration, hidden state in VMEM scratch
# ---------------------------------------------------------------------------
def lfads_gen_attn_kernel(xs_ref, h0_ref, enc_ref,
                          wx3_ref, wh2_ref, whc_ref, b3_ref,
                          wago_ref, wae_ref, woe_ref, wfc_ref,
                          out_ref, h_state):
    f32 = jnp.float32
    s = pl.program_id(0)

    @pl.when(s == 0)
    def _():
        h_state[...] = h0_ref[...]

    x = xs_ref[0]                       # (B, I)   current step's input
    h = h_state[...]                    # (B, G)   carried hidden state
    B, G = h.shape
    E2 = wae_ref.shape[1]               # 2 * encoder_size
    F = wfc_ref.shape[1]

    # ---------------- fused LFADS GenGRU cell (3 matmuls) ----------------
    xh = jnp.dot(x, wx3_ref[...], preferred_element_type=f32) + b3_ref[...]   # (B, 3G)
    hh = jnp.dot(h, wh2_ref[...], preferred_element_type=f32)                 # (B, 2G)
    r = jax.nn.sigmoid(xh[:, :G] + hh[:, :G])
    u = jax.nn.sigmoid(xh[:, G:2 * G] + hh[:, G:2 * G] + FORGET_BIAS)
    c = jnp.tanh(xh[:, 2 * G:] +
                 jnp.dot(r * h, whc_ref[...], preferred_element_type=f32))
    gen = jnp.clip(u * h + (1.0 - u) * c, -CLIP_VAL, CLIP_VAL)
    h_state[...] = gen                  # carry to next grid step

    # ---------------- encoder attention (2 matmuls + fused softmax) ----------------
    e_all = enc_ref[...]                # (T*B, 2E), time-major rows, batch-padded
    T = e_all.shape[0] // B
    e_proj = jnp.dot(e_all, wae_ref[...], preferred_element_type=f32)         # (T*B, 2E)
    g_proj = jnp.dot(gen, wago_ref[...], preferred_element_type=f32)          # (B, 2E+G)
    g_term = g_proj[:, :E2]             # gen part of attn_alpha
    out_g = g_proj[:, E2:]              # gen part of attn_out

    logits = [jnp.maximum(g_term + e_proj[t * B:(t + 1) * B], 0.0)            # ReLU
              for t in range(T)]
    m = logits[0]
    for t in range(1, T):
        m = jnp.maximum(m, logits[t])
    denom = jnp.zeros_like(m)
    ctx = jnp.zeros_like(m)
    for t in range(T):                  # softmax over T fused with weighted sum
        p = jnp.exp(logits[t] - m)
        denom = denom + p
        ctx = ctx + p * e_all[t * B:(t + 1) * B]
    ctx = ctx / denom

    a_out = jnp.tanh(out_g + jnp.dot(ctx, woe_ref[...], preferred_element_type=f32))
    fac = jnp.dot(a_out, wfc_ref[...], preferred_element_type=f32)            # no bias

    # ---------------- lane-dense packed store: single (B, 128) write ----------------
    pad = out_ref.shape[-1] - (G + F)
    parts = [gen, fac]
    if pad:
        parts.append(jnp.zeros((B, pad), f32))
    out_ref[0] = jnp.concatenate(parts, axis=-1)


# ---------------------------------------------------------------------------
# wrappers
# ---------------------------------------------------------------------------
def lfads_generator_encoder_attn_rollout(xs, h0, enc, params):
    """xs:(S,B,I)  h0:(B,G)  enc:(T,B,2E)  ->  (gens:(S,B,G), facs:(S,B,F)).

    One pallas_call for the whole sequence: weights + encoder outputs stay
    VMEM-resident, hidden state carried in VMEM scratch across grid steps.
    """
    S, B, I = xs.shape
    G = h0.shape[1]
    T, _, E2 = enc.shape
    F = params["w_fc"].shape[1]
    Bp = _round_up(B, SUBLANE)          # sublane-pad the batch
    W = _round_up(G + F, LANE)          # lane-dense packed output width

    def pad_b(a, axis):
        if Bp == B:
            return a
        widths = [(0, 0)] * a.ndim
        widths[axis] = (0, Bp - B)
        return jnp.pad(a, widths)

    xs_p = pad_b(xs, 1)                                   # (S, Bp, I)
    h0_p = pad_b(h0, 0)                                   # (Bp, G)
    enc_p = pad_b(enc, 1).reshape(T * Bp, E2)             # (T*Bp, 2E), contiguous

    # fused weights (built once in the wrapper)
    wx3 = jnp.concatenate([params["w_xr"], params["w_xu"], params["w_xc"]], axis=1)
    wh2 = jnp.concatenate([params["w_hr"], params["w_hu"]], axis=1)
    b3 = jnp.concatenate([params["b_r"], params["b_u"], params["b_c"]], axis=1)
    wago = jnp.concatenate([params["w_ag"], params["w_og"]], axis=1)          # (G, 2E+G)

    args = (xs_p, h0_p, enc_p, wx3, wh2, params["w_hc"], b3,
            wago, params["w_ae"], params["w_oe"], params["w_fc"])

    def const_spec(a):
        nd = a.ndim
        return pl.BlockSpec(a.shape, lambda s, _nd=nd: (0,) * _nd)

    in_specs = [pl.BlockSpec((1, Bp, I), lambda s: (s, 0, 0))] + \
               [const_spec(a) for a in args[1:]]

    out = pl.pallas_call(
        lfads_gen_attn_kernel,
        out_shape=jax.ShapeDtypeStruct((S, Bp, W), jnp.float32),
        grid_spec=pltpu.PrefetchScalarGridSpec(
            num_scalar_prefetch=0,
            grid=(S,),
            in_specs=in_specs,
            out_specs=pl.BlockSpec((1, Bp, W), lambda s: (s, 0, 0)),
            scratch_shapes=[pltpu.VMEM((Bp, G), jnp.float32)],
        ),
        compiler_params=pltpu.CompilerParams(
            dimension_semantics=("arbitrary",)),          # time axis is a recurrence
    )(*args)

    gens = out[:, :B, :G]
    facs = out[:, :B, G:G + F]
    return gens, facs


def lfads_generator_encoder_attn_cell(x, h, enc, params):
    """Single cell step (the module forward): x:(B,I) h:(B,G) enc:(T,B,2E)."""
    gens, facs = lfads_generator_encoder_attn_rollout(x[None], h, enc, params)
    return gens[0], facs[0]


# ---------------------------------------------------------------------------
# pure-JAX reference (mirrors the PyTorch forward exactly)
# ---------------------------------------------------------------------------
def reference_step(x, h, enc, p):
    r = jax.nn.sigmoid(x @ p["w_xr"] + h @ p["w_hr"] + p["b_r"])
    u = jax.nn.sigmoid(x @ p["w_xu"] + h @ p["w_hu"] + p["b_u"] + FORGET_BIAS)
    c = jnp.tanh(x @ p["w_xc"] + (r * h) @ p["w_hc"] + p["b_c"])
    gen = jnp.clip(u * h + (1.0 - u) * c, -CLIP_VAL, CLIP_VAL)

    enc_p = jnp.transpose(enc, (1, 0, 2))                         # (B,T,2E)
    logits = jax.nn.relu((gen @ p["w_ag"])[:, None, :] +
                         jnp.einsum("bte,ef->btf", enc_p, p["w_ae"]))
    attn_w = jax.nn.softmax(logits, axis=1)
    ctx = (enc_p * attn_w).sum(axis=1)
    a_out = jnp.tanh(gen @ p["w_og"] + ctx @ p["w_oe"])
    return gen, a_out @ p["w_fc"]


def reference_rollout(xs, h0, enc, p):
    gens, facs, h = [], [], h0
    for t in range(xs.shape[0]):
        h, f = reference_step(xs[t], h, enc, p)
        gens.append(h)
        facs.append(f)
    return jnp.stack(gens), jnp.stack(facs)


def init_params(key, input_size, generator_size, encoder_size, factor_size):
    G, I, E2, F = generator_size, input_size, 2 * encoder_size, factor_size

    def uni(k, shape, fan_in):
        s = 1.0 / jnp.sqrt(jnp.float32(fan_in))
        return jax.random.uniform(k, shape, jnp.float32, -s, s)

    ks = jax.random.split(key, 14)
    attn_in = G + E2
    w_alpha = uni(ks[9], (attn_in, E2), attn_in)
    w_out = uni(ks[10], (attn_in, G), attn_in)
    return {
        "w_xr": uni(ks[0], (I, G), I + G), "w_hr": uni(ks[1], (G, G), I + G),
        "b_r": uni(ks[2], (1, G), I + G),
        "w_xu": uni(ks[3], (I, G), I + G), "w_hu": uni(ks[4], (G, G), I + G),
        "b_u": uni(ks[5], (1, G), I + G),
        "w_xc": uni(ks[6], (I, G), I + G), "w_hc": uni(ks[7], (G, G), I + G),
        "b_c": uni(ks[8], (1, G), I + G),
        # cat order in forward is (generator_state, encoder) -> split weight accordingly
        "w_ag": w_alpha[:G], "w_ae": w_alpha[G:],
        "w_og": w_out[:G], "w_oe": w_out[G:],
        "w_fc": uni(ks[11], (G, F), G),
    }


if __name__ == "__main__":
    # batch, input, generator, encoder, factor, encoder-seq, generator-steps
    B, I, G, E, F, T, S = 4, 8, 32, 16, 8, 6, 5

    key = jax.random.PRNGKey(0)
    k_p, k_x, k_h, k_e = jax.random.split(key, 4)
    params = init_params(k_p, I, G, E, F)
    xs = jax.random.normal(k_x, (S, B, I), jnp.float32)
    h0 = jax.random.normal(k_h, (B, G), jnp.float32)
    enc = jax.random.normal(k_e, (T, B, 2 * E), jnp.float32)

    # Both kernel and reference now use default MXU matmul precision (bf16 inputs,
    # f32 accumulation), so tolerances cover the bf16 input-truncation error.
    TOL = dict(atol=5e-3, rtol=5e-3)

    # --- single cell step (matches the module forward) ---
    gen_k, fac_k = lfads_generator_encoder_attn_cell(xs[0], h0, enc, params)
    jax.block_until_ready((gen_k, fac_k))
    gen_r, fac_r = reference_step(xs[0], h0, enc, params)
    assert gen_k.shape == (B, G) and fac_k.shape == (B, F)
    assert jnp.allclose(gen_k, gen_r, **TOL)
    assert jnp.allclose(fac_k, fac_r, **TOL)

    # --- full rollout: one pallas_call, weights stay VMEM-resident across steps ---
    gens_k, facs_k = lfads_generator_encoder_attn_rollout(xs, h0, enc, params)
    jax.block_until_ready((gens_k, facs_k))
    gens_r, facs_r = reference_rollout(xs, h0, enc, params)
    assert gens_k.shape == (S, B, G) and facs_k.shape == (S, B, F)
    assert jnp.allclose(gens_k, gens_r, **TOL)
    assert jnp.allclose(facs_k, facs_r, **TOL)

    print("KERNEL_OK")
</pallas_src>

<mosaic_0001>
module attributes {stable_mosaic.version = 11 : i64} {
  func.func @lfads_gen_attn_kernel(%arg0: i32, %arg1: memref<1x8x8xf32, #tpu.memory_space<vmem>>, %arg2: memref<8x32xf32, #tpu.memory_space<vmem>>, %arg3: memref<48x32xf32, #tpu.memory_space<vmem>>, %arg4: memref<8x96xf32, #tpu.memory_space<vmem>>, %arg5: memref<32x64xf32, #tpu.memory_space<vmem>>, %arg6: memref<32x32xf32, #tpu.memory_space<vmem>>, %arg7: memref<1x96xf32, #tpu.memory_space<vmem>>, %arg8: memref<32x64xf32, #tpu.memory_space<vmem>>, %arg9: memref<32x32xf32, #tpu.memory_space<vmem>>, %arg10: memref<32x32xf32, #tpu.memory_space<vmem>>, %arg11: memref<32x8xf32, #tpu.memory_space<vmem>>, %arg12: memref<1x8x128xf32, #tpu.memory_space<vmem>>, %arg13: memref<8x32xf32, #tpu.memory_space<vmem>>) attributes {dimension_semantics = [#tpu.dimension_semantics<arbitrary>], iteration_bounds = array<i64: 1>, scalar_prefetch = 0 : i64, scratch_operands = 1 : i64, tpu.core_type = #tpu.core_type<tc>, window_params = [{transform_indices = @transform_0, window_bounds = array<i64: 1, 8, 8>}, {pipeline_mode = #tpu.pipeline_mode<synchronous>, transform_indices = @transform_1, window_bounds = array<i64: 8, 32>}, {pipeline_mode = #tpu.pipeline_mode<synchronous>, transform_indices = @transform_2, window_bounds = array<i64: 48, 32>}, {pipeline_mode = #tpu.pipeline_mode<synchronous>, transform_indices = @transform_3, window_bounds = array<i64: 8, 96>}, {pipeline_mode = #tpu.pipeline_mode<synchronous>, transform_indices = @transform_4, window_bounds = array<i64: 32, 64>}, {pipeline_mode = #tpu.pipeline_mode<synchronous>, transform_indices = @transform_5, window_bounds = array<i64: 32, 32>}, {pipeline_mode = #tpu.pipeline_mode<synchronous>, transform_indices = @transform_6, window_bounds = array<i64: 1, 96>}, {pipeline_mode = #tpu.pipeline_mode<synchronous>, transform_indices = @transform_7, window_bounds = array<i64: 32, 64>}, {pipeline_mode = #tpu.pipeline_mode<synchronous>, transform_indices = @transform_8, window_bounds = array<i64: 32, 32>}, {pipeline_mode = #tpu.pipeline_mode<synchronous>, transform_indices = @transform_9, window_bounds = array<i64: 32, 32>}, {pipeline_mode = #tpu.pipeline_mode<synchronous>, transform_indices = @transform_10, window_bounds = array<i64: 32, 8>}, {transform_indices = @transform_11, window_bounds = array<i64: 1, 8, 128>}]} {
    %c0_i32 = arith.constant 0 : i32
    %0 = arith.cmpi eq, %arg0, %c0_i32 : i32
    %1 = arith.extui %0 : i1 to i32
    %c0_i32_0 = arith.constant 0 : i32
    %2 = arith.cmpi ne, %1, %c0_i32_0 : i32
    scf.if %2 {
      %c0_49 = arith.constant 0 : index
      %c0_50 = arith.constant 0 : index
      %133 = vector.load %arg2[%c0_49, %c0_50] : memref<8x32xf32, #tpu.memory_space<vmem>>, vector<8x32xf32>
      %c0_51 = arith.constant 0 : index
      %c0_52 = arith.constant 0 : index
      %134 = vector.load %arg13[%c0_51, %c0_52] : memref<8x32xf32, #tpu.memory_space<vmem>>, vector<8x32xf32>
      tpu.vector_store %arg13[%c0_51, %c0_52], %133 {strides = array<i32>} : memref<8x32xf32, #tpu.memory_space<vmem>>, vector<8x32xf32>,
    } else {
    }
    %c0 = arith.constant 0 : index
    %c0_1 = arith.constant 0 : index
    %c0_2 = arith.constant 0 : index
    %3 = vector.load %arg1[%c0, %c0_1, %c0_2] : memref<1x8x8xf32, #tpu.memory_space<vmem>>, vector<1x8x8xf32>
    %4 = vector.shape_cast %3 : vector<1x8x8xf32> to vector<8x8xf32>
    %c0_3 = arith.constant 0 : index
    %c0_4 = arith.constant 0 : index
    %5 = vector.load %arg13[%c0_3, %c0_4] : memref<8x32xf32, #tpu.memory_space<vmem>>, vector<8x32xf32>
    %c0_5 = arith.constant 0 : index
    %c0_6 = arith.constant 0 : index
    %6 = vector.load %arg4[%c0_5, %c0_6] : memref<8x96xf32, #tpu.memory_space<vmem>>, vector<8x96xf32>
    %cst = arith.constant dense<0.000000e+00> : vector<8x96xf32>
    %7 = tpu.matmul %4, %6, %cst {dimension_numbers = #tpu.dot_dimension_numbers<[1], [0], [0], [1], [0, 0, 1, 1], [], []>} : vector<8x8xf32>, vector<8x96xf32>, vector<8x96xf32> -> vector<8x96xf32>
    %c0_7 = arith.constant 0 : index
    %c0_8 = arith.constant 0 : index
    %8 = vector.load %arg7[%c0_7, %c0_8] : memref<1x96xf32, #tpu.memory_space<vmem>>, vector<1x96xf32>
    %9 = vector.broadcast %8 : vector<1x96xf32> to vector<8x96xf32>
    %10 = arith.addf %7, %9 : vector<8x96xf32>
    %c0_9 = arith.constant 0 : index
    %c0_10 = arith.constant 0 : index
    %11 = vector.load %arg5[%c0_9, %c0_10] : memref<32x64xf32, #tpu.memory_space<vmem>>, vector<32x64xf32>
    %cst_11 = arith.constant dense<0.000000e+00> : vector<8x64xf32>
    %12 = tpu.matmul %5, %11, %cst_11 {dimension_numbers = #tpu.dot_dimension_numbers<[1], [0], [0], [1], [0, 0, 1, 1], [], []>} : vector<8x32xf32>, vector<32x64xf32>, vector<8x64xf32> -> vector<8x64xf32>
    %13 = vector.extract_strided_slice %10 {offsets = [0, 0], sizes = [8, 32], strides = [1, 1]} : vector<8x96xf32> to vector<8x32xf32>
    %14 = vector.extract_strided_slice %12 {offsets = [0, 0], sizes = [8, 32], strides = [1, 1]} : vector<8x64xf32> to vector<8x32xf32>
    %15 = arith.addf %13, %14 : vector<8x32xf32>
    %16 = arith.negf %15 : vector<8x32xf32>
    %17 = math.exp %16 : vector<8x32xf32>
    %cst_12 = arith.constant 1.000000e+00 : f32
    %18 = vector.broadcast %cst_12 : f32 to vector<8x32xf32>
    %19 = arith.addf %18, %17 : vector<8x32xf32>
    %20 = arith.divf %18, %19 : vector<8x32xf32>
    %21 = vector.extract_strided_slice %10 {offsets = [0, 32], sizes = [8, 32], strides = [1, 1]} : vector<8x96xf32> to vector<8x32xf32>
    %22 = vector.extract_strided_slice %12 {offsets = [0, 32], sizes = [8, 32], strides = [1, 1]} : vector<8x64xf32> to vector<8x32xf32>
    %23 = arith.addf %21, %22 : vector<8x32xf32>
    %cst_13 = arith.constant 1.000000e+00 : f32
    %24 = vector.broadcast %cst_13 : f32 to vector<8x32xf32>
    %25 = arith.addf %23, %24 : vector<8x32xf32>
    %26 = arith.negf %25 : vector<8x32xf32>
    %27 = math.exp %26 : vector<8x32xf32>
    %cst_14 = arith.constant 1.000000e+00 : f32
    %28 = vector.broadcast %cst_14 : f32 to vector<8x32xf32>
    %29 = arith.addf %28, %27 : vector<8x32xf32>
    %30 = arith.divf %28, %29 : vector<8x32xf32>
    %31 = vector.extract_strided_slice %10 {offsets = [0, 64], sizes = [8, 32], strides = [1, 1]} : vector<8x96xf32> to vector<8x32xf32>
    %32 = arith.mulf %20, %5 : vector<8x32xf32>
    %c0_15 = arith.constant 0 : index
    %c0_16 = arith.constant 0 : index
    %33 = vector.load %arg6[%c0_15, %c0_16] : memref<32x32xf32, #tpu.memory_space<vmem>>, vector<32x32xf32>
    %cst_17 = arith.constant dense<0.000000e+00> : vector<8x32xf32>
    %34 = tpu.matmul %32, %33, %cst_17 {dimension_numbers = #tpu.dot_dimension_numbers<[1], [0], [0], [1], [0, 0, 1, 1], [], []>} : vector<8x32xf32>, vector<32x32xf32>, vector<8x32xf32> -> vector<8x32xf32>
    %35 = arith.addf %31, %34 : vector<8x32xf32>
    %36 = math.tanh %35 : vector<8x32xf32>
    %37 = arith.mulf %30, %5 : vector<8x32xf32>
    %cst_18 = arith.constant 1.000000e+00 : f32
    %38 = vector.broadcast %cst_18 : f32 to vector<8x32xf32>
    %39 = arith.subf %38, %30 : vector<8x32xf32>
    %40 = arith.mulf %39, %36 : vector<8x32xf32>
    %41 = arith.addf %37, %40 : vector<8x32xf32>
    %cst_19 = arith.constant -5.000000e+00 : f32
    %cst_20 = arith.constant 5.000000e+00 : f32
    %42 = vector.broadcast %cst_19 : f32 to vector<8x32xf32>
    %43 = arith.maximumf %42, %41 : vector<8x32xf32>
    %44 = vector.broadcast %cst_20 : f32 to vector<8x32xf32>
    %45 = arith.minimumf %44, %43 : vector<8x32xf32>
    %c0_21 = arith.constant 0 : index
    %c0_22 = arith.constant 0 : index
    %46 = vector.load %arg13[%c0_21, %c0_22] : memref<8x32xf32, #tpu.memory_space<vmem>>, vector<8x32xf32>
    tpu.vector_store %arg13[%c0_21, %c0_22], %45 {strides = array<i32>} : memref<8x32xf32, #tpu.memory_space<vmem>>, vector<8x32xf32>,
    %c0_23 = arith.constant 0 : index
    %c0_24 = arith.constant 0 : index
    %47 = vector.load %arg3[%c0_23, %c0_24] : memref<48x32xf32, #tpu.memory_space<vmem>>, vector<48x32xf32>
    %c0_25 = arith.constant 0 : index
    %c0_26 = arith.constant 0 : index
    %48 = vector.load %arg9[%c0_25, %c0_26] : memref<32x32xf32, #tpu.memory_space<vmem>>, vector<32x32xf32>
    %cst_27 = arith.constant dense<0.000000e+00> : vector<48x32xf32>
    %49 = tpu.matmul %47, %48, %cst_27 {dimension_numbers = #tpu.dot_dimension_numbers<[1], [0], [0], [1], [0, 0, 1, 1], [], []>} : vector<48x32xf32>, vector<32x32xf32>, vector<48x32xf32> -> vector<48x32xf32>
    %c0_28 = arith.constant 0 : index
    %c0_29 = arith.constant 0 : index
    %50 = vector.load %arg8[%c0_28, %c0_29] : memref<32x64xf32, #tpu.memory_space<vmem>>, vector<32x64xf32>
    %cst_30 = arith.constant dense<0.000000e+00> : vector<8x64xf32>
    %51 = tpu.matmul %45, %50, %cst_30 {dimension_numbers = #tpu.dot_dimension_numbers<[1], [0], [0], [1], [0, 0, 1, 1], [], []>} : vector<8x32xf32>, vector<32x64xf32>, vector<8x64xf32> -> vector<8x64xf32>
    %52 = vector.extract_strided_slice %51 {offsets = [0, 0], sizes = [8, 32], strides = [1, 1]} : vector<8x64xf32> to vector<8x32xf32>
    %53 = vector.extract_strided_slice %51 {offsets = [0, 32], sizes = [8, 32], strides = [1, 1]} : vector<8x64xf32> to vector<8x32xf32>
    %54 = vector.extract_strided_slice %49 {offsets = [0, 0], sizes = [8, 32], strides = [1, 1]} : vector<48x32xf32> to vector<8x32xf32>
    %55 = arith.addf %52, %54 : vector<8x32xf32>
    %cst_31 = arith.constant 0.000000e+00 : f32
    %56 = vector.broadcast %cst_31 : f32 to vector<8x32xf32>
    %57 = arith.maximumf %55, %56 : vector<8x32xf32>
    %58 = vector.extract_strided_slice %49 {offsets = [8, 0], sizes = [8, 32], strides = [1, 1]} : vector<48x32xf32> to vector<8x32xf32>
    %59 = arith.addf %52, %58 : vector<8x32xf32>
    %cst_32 = arith.constant 0.000000e+00 : f32
    %60 = vector.broadcast %cst_32 : f32 to vector<8x32xf32>
    %61 = arith.maximumf %59, %60 : vector<8x32xf32>
    %62 = vector.extract_strided_slice %49 {offsets = [16, 0], sizes = [8, 32], strides = [1, 1]} : vector<48x32xf32> to vector<8x32xf32>
    %63 = arith.addf %52, %62 : vector<8x32xf32>
    %cst_33 = arith.constant 0.000000e+00 : f32
    %64 = vector.broadcast %cst_33 : f32 to vector<8x32xf32>
    %65 = arith.maximumf %63, %64 : vector<8x32xf32>
    %66 = vector.extract_strided_slice %49 {offsets = [24, 0], sizes = [8, 32], strides = [1, 1]} : vector<48x32xf32> to vector<8x32xf32>
    %67 = arith.addf %52, %66 : vector<8x32xf32>
    %cst_34 = arith.constant 0.000000e+00 : f32
    %68 = vector.broadcast %cst_34 : f32 to vector<8x32xf32>
    %69 = arith.maximumf %67, %68 : vector<8x32xf32>
    %70 = vector.extract_strided_slice %49 {offsets = [32, 0], sizes = [8, 32], strides = [1, 1]} : vector<48x32xf32> to vector<8x32xf32>
    %71 = arith.addf %52, %70 : vector<8x32xf32>
    %cst_35 = arith.constant 0.000000e+00 : f32
    %72 = vector.broadcast %cst_35 : f32 to vector<8x32xf32>
    %73 = arith.maximumf %71, %72 : vector<8x32xf32>
    %74 = vector.extract_strided_slice %49 {offsets = [40, 0], sizes = [8, 32], strides = [1, 1]} : vector<48x32xf32> to vector<8x32xf32>
    %75 = arith.addf %52, %74 : vector<8x32xf32>
    %cst_36 = arith.constant 0.000000e+00 : f32
    %76 = vector.broadcast %cst_36 : f32 to vector<8x32xf32>
    %77 = arith.maximumf %75, %76 : vector<8x32xf32>
    %78 = arith.maximumf %57, %61 : vector<8x32xf32>
    %79 = arith.maximumf %78, %65 : vector<8x32xf32>
    %80 = arith.maximumf %79, %69 : vector<8x32xf32>
    %81 = arith.maximumf %80, %73 : vector<8x32xf32>
    %82 = arith.maximumf %81, %77 : vector<8x32xf32>
    %cst_37 = arith.constant 0.000000e+00 : f32
    %83 = vector.broadcast %cst_37 : f32 to vector<8x32xf32>
    %cst_38 = arith.constant 0.000000e+00 : f32
    %84 = vector.broadcast %cst_38 : f32 to vector<8x32xf32>
    %85 = arith.subf %57, %82 : vector<8x32xf32>
    %86 = math.exp %85 : vector<8x32xf32>
    %87 = arith.addf %83, %86 : vector<8x32xf32>
    %88 = vector.extract_strided_slice %47 {offsets = [0, 0], sizes = [8, 32], strides = [1, 1]} : vector<48x32xf32> to vector<8x32xf32>
    %89 = arith.mulf %86, %88 : vector<8x32xf32>
    %90 = arith.addf %84, %89 : vector<8x32xf32>
    %91 = arith.subf %61, %82 : vector<8x32xf32>
    %92 = math.exp %91 : vector<8x32xf32>
    %93 = arith.addf %87, %92 : vector<8x32xf32>
    %94 = vector.extract_strided_slice %47 {offsets = [8, 0], sizes = [8, 32], strides = [1, 1]} : vector<48x32xf32> to vector<8x32xf32>
    %95 = arith.mulf %92, %94 : vector<8x32xf32>
    %96 = arith.addf %90, %95 : vector<8x32xf32>
    %97 = arith.subf %65, %82 : vector<8x32xf32>
    %98 = math.exp %97 : vector<8x32xf32>
    %99 = arith.addf %93, %98 : vector<8x32xf32>
    %100 = vector.extract_strided_slice %47 {offsets = [16, 0], sizes = [8, 32], strides = [1, 1]} : vector<48x32xf32> to vector<8x32xf32>
    %101 = arith.mulf %98, %100 : vector<8x32xf32>
    %102 = arith.addf %96, %101 : vector<8x32xf32>
    %103 = arith.subf %69, %82 : vector<8x32xf32>
    %104 = math.exp %103 : vector<8x32xf32>
    %105 = arith.addf %99, %104 : vector<8x32xf32>
    %106 = vector.extract_strided_slice %47 {offsets = [24, 0], sizes = [8, 32], strides = [1, 1]} : vector<48x32xf32> to vector<8x32xf32>
    %107 = arith.mulf %104, %106 : vector<8x32xf32>
    %108 = arith.addf %102, %107 : vector<8x32xf32>
    %109 = arith.subf %73, %82 : vector<8x32xf32>
    %110 = math.exp %109 : vector<8x32xf32>
    %111 = arith.addf %105, %110 : vector<8x32xf32>
    %112 = vector.extract_strided_slice %47 {offsets = [32, 0], sizes = [8, 32], strides = [1, 1]} : vector<48x32xf32> to vector<8x32xf32>
    %113 = arith.mulf %110, %112 : vector<8x32xf32>
    %114 = arith.addf %108, %113 : vector<8x32xf32>
    %115 = arith.subf %77, %82 : vector<8x32xf32>
    %116 = math.exp %115 : vector<8x32xf32>
    %117 = arith.addf %111, %116 : vector<8x32xf32>
    %118 = vector.extract_strided_slice %47 {offsets = [40, 0], sizes = [8, 32], strides = [1, 1]} : vector<48x32xf32> to vector<8x32xf32>
    %119 = arith.mulf %116, %118 : vector<8x32xf32>
    %120 = arith.addf %114, %119 : vector<8x32xf32>
    %121 = arith.divf %120, %117 : vector<8x32xf32>
    %c0_39 = arith.constant 0 : index
    %c0_40 = arith.constant 0 : index
    %122 = vector.load %arg10[%c0_39, %c0_40] : memref<32x32xf32, #tpu.memory_space<vmem>>, vector<32x32xf32>
    %cst_41 = arith.constant dense<0.000000e+00> : vector<8x32xf32>
    %123 = tpu.matmul %121, %122, %cst_41 {dimension_numbers = #tpu.dot_dimension_numbers<[1], [0], [0], [1], [0, 0, 1, 1], [], []>} : vector<8x32xf32>, vector<32x32xf32>, vector<8x32xf32> -> vector<8x32xf32>
    %124 = arith.addf %53, %123 : vector<8x32xf32>
    %125 = math.tanh %124 : vector<8x32xf32>
    %c0_42 = arith.constant 0 : index
    %c0_43 = arith.constant 0 : index
    %126 = vector.load %arg11[%c0_42, %c0_43] : memref<32x8xf32, #tpu.memory_space<vmem>>, vector<32x8xf32>
    %cst_44 = arith.constant dense<0.000000e+00> : vector<8x8xf32>
    %127 = tpu.matmul %125, %126, %cst_44 {dimension_numbers = #tpu.dot_dimension_numbers<[1], [0], [0], [1], [0, 0, 1, 1], [], []>} : vector<8x32xf32>, vector<32x8xf32>, vector<8x8xf32> -> vector<8x8xf32>
    %cst_45 = arith.constant 0.000000e+00 : f32
    %128 = vector.broadcast %cst_45 : f32 to vector<8x88xf32>
    %129 = tpu.concatenate %45, %127, %128 in 1 : vector<8x32xf32>, vector<8x8xf32>, vector<8x88xf32> -> vector<8x128xf32>
    %c0_46 = arith.constant 0 : index
    %c0_47 = arith.constant 0 : index
    %c0_48 = arith.constant 0 : index
    %130 = vector.load %arg12[%c0_46, %c0_47, %c0_48] : memref<1x8x128xf32, #tpu.memory_space<vmem>>, vector<1x8x128xf32>
    %131 = vector.shape_cast %130 : vector<1x8x128xf32> to vector<8x128xf32>
    %132 = vector.shape_cast %129 : vector<8x128xf32> to vector<1x8x128xf32>
    tpu.vector_store %arg12[%c0_46, %c0_47, %c0_48], %132 {strides = array<i32>} : memref<1x8x128xf32, #tpu.memory_space<vmem>>, vector<1x8x128xf32>,
    return
  }
  func.func @transform_0(%arg0: i32) -> (i32, i32, i32) {
    %c0_i32 = arith.constant 0 : i32
    %c0_i32_0 = arith.constant 0 : i32
    %c0_i32_1 = arith.constant 0 : i32
    return %arg0, %c0_i32, %c0_i32_0 : i32, i32, i32
  }
  func.func @transform_1(%arg0: i32) -> (i32, i32) {
    %c0_i32 = arith.constant 0 : i32
    %c0_i32_0 = arith.constant 0 : i32
    %c0_i32_1 = arith.constant 0 : i32
    return %c0_i32, %c0_i32_0 : i32, i32
  }
  func.func @transform_2(%arg0: i32) -> (i32, i32) {
    %c0_i32 = arith.constant 0 : i32
    %c0_i32_0 = arith.constant 0 : i32
    %c0_i32_1 = arith.constant 0 : i32
    return %c0_i32, %c0_i32_0 : i32, i32
  }
  func.func @transform_3(%arg0: i32) -> (i32, i32) {
    %c0_i32 = arith.constant 0 : i32
    %c0_i32_0 = arith.constant 0 : i32
    %c0_i32_1 = arith.constant 0 : i32
    return %c0_i32, %c0_i32_0 : i32, i32
  }
  func.func @transform_4(%arg0: i32) -> (i32, i32) {
    %c0_i32 = arith.constant 0 : i32
    %c0_i32_0 = arith.constant 0 : i32
    %c0_i32_1 = arith.constant 0 : i32
    return %c0_i32, %c0_i32_0 : i32, i32
  }
  func.func @transform_5(%arg0: i32) -> (i32, i32) {
    %c0_i32 = arith.constant 0 : i32
    %c0_i32_0 = arith.constant 0 : i32
    %c0_i32_1 = arith.constant 0 : i32
    return %c0_i32, %c0_i32_0 : i32, i32
  }
  func.func @transform_6(%arg0: i32) -> (i32, i32) {
    %c0_i32 = arith.constant 0 : i32
    %c0_i32_0 = arith.constant 0 : i32
    %c0_i32_1 = arith.constant 0 : i32
    return %c0_i32, %c0_i32_0 : i32, i32
  }
  func.func @transform_7(%arg0: i32) -> (i32, i32) {
    %c0_i32 = arith.constant 0 : i32
    %c0_i32_0 = arith.constant 0 : i32
    %c0_i32_1 = arith.constant 0 : i32
    return %c0_i32, %c0_i32_0 : i32, i32
  }
  func.func @transform_8(%arg0: i32) -> (i32, i32) {
    %c0_i32 = arith.constant 0 : i32
    %c0_i32_0 = arith.constant 0 : i32
    %c0_i32_1 = arith.constant 0 : i32
    return %c0_i32, %c0_i32_0 : i32, i32
  }
  func.func @transform_9(%arg0: i32) -> (i32, i32) {
    %c0_i32 = arith.constant 0 : i32
    %c0_i32_0 = arith.constant 0 : i32
    %c0_i32_1 = arith.constant 0 : i32
    return %c0_i32, %c0_i32_0 : i32, i32
  }
  func.func @transform_10(%arg0: i32) -> (i32, i32) {
    %c0_i32 = arith.constant 0 : i32
    %c0_i32_0 = arith.constant 0 : i32
    %c0_i32_1 = arith.constant 0 : i32
    return %c0_i32, %c0_i32_0 : i32, i32
  }
  func.func @transform_11(%arg0: i32) -> (i32, i32, i32) {
    %c0_i32 = arith.constant 0 : i32
    %c0_i32_0 = arith.constant 0 : i32
    %c0_i32_1 = arith.constant 0 : i32
    return %arg0, %c0_i32, %c0_i32_0 : i32, i32, i32
  }
}

</mosaic_0001>

<bundles_post_ra>
// kernel: tpu_custom_call.1
= control target key start
LH: loop header
LB: loop body
LE: loop exit
PB: predicated region body
PF: predicated region fallthrough
CT: control target
= control target key end

     0   :  { %16 = vsyncpa [#allocation4], 0  ;;  %s855_s0 = inlined_call_operand.vmem [shape: f32[1,8,8], index: 0, kind: input, shape index: {}]   ;;  %s856_s1 = inlined_call_operand.vmem [shape: f32[8,32], index: 1, kind: input, shape index: {}]   ;;  %s857_s2 = inlined_call_operand.vmem [shape: f32[48,32], index: 2, kind: input, shape index: {}]   ;;  %s858_s3 = inlined_call_operand.vmem [shape: f32[8,96], index: 3, kind: input, shape index: {}]   ;;  %s859_s4 = inlined_call_operand.vmem [shape: f32[32,64], index: 4, kind: input, shape index: {}]   ;;  %s860_s5 = inlined_call_operand.vmem [shape: f32[32,32], index: 5, kind: input, shape index: {}]   ;;  %s861_s6 = inlined_call_operand.vmem [shape: f32[1,96], index: 6, kind: input, shape index: {}]   ;;  %s862_s7 = inlined_call_operand.hbm [shape: f32[32,64], index: 7, kind: input, shape index: {}]   ;;  %s863_s8 = inlined_call_operand.hbm [shape: f32[32,32], index: 8, kind: input, shape index: {}]   ;;  %s864_s9 = inlined_call_operand.hbm [shape: f32[32,32], index: 9, kind: input, shape index: {}]   ;;  %s865_s10 = inlined_call_operand.vmem [shape: f32[32,8], index: 10, kind: input, shape index: {}]   ;;  %s866_s11 = inlined_call_operand.hbm [shape: f32[1,8,128], index: 11, kind: output, shape index: {}]  }
   0x1   :  { %17 = vsyncpa [#allocation7], 0 }
   0x2   :  { %18 = vsyncpa [#allocation5], 0  ;;  %s50_s19 = sshll.u32 %s863_s8, 4  ;;  %s650_s20 = smov [#allocation6]   ;;  %s51_s19 = int_to_ptr.hbm [resolvable:$true] %s50_s19 }
   0x3   :  { %s52_s21 = sshll.u32 %s650_s20, 4  ;;  %s37_s24 = sshll.u32 %s862_s7, 4  ;;  %s53_s21 = int_to_ptr.vmem [resolvable:$true] %s52_s21  ;;  %s38_s24 = int_to_ptr.hbm [resolvable:$true] %s37_s24 }
   0x4   :  { %s651_s25 = smov 128   ;;  %s652_s26 = smov 8  }
   0x5   :  { %58 = dma.hbm_to_vmem [thread:$0]  %s51_s19, 512, %s53_s21, [#allocation7], %s651_s25, %s651_s25, %s652_s26  }
   0x6   :  { %s653_s27 = smov [#allocation3]   ;;  %s63_s12 = sshll.u32 %s864_s9, 4  ;;  %s64_s12 = int_to_ptr.hbm [resolvable:$true] %s63_s12 }
   0x7   :  { %s39_s28 = sshll.u32 %s653_s27, 4  ;;  %s654_s8 = smov [#allocation8]   ;;  %s40_s28 = int_to_ptr.vmem [resolvable:$true] %s39_s28 }
   0x8   :  { %45 = dma.hbm_to_vmem [thread:$0]  %s38_s24, 512, %s40_s28, [#allocation4], %s651_s25, %s651_s25, %s652_s26  }
   0x9   :  { %s65_s13 = sshll.u32 %s654_s8, 4  ;;  %s66_s13 = int_to_ptr.vmem [resolvable:$true] %s65_s13 }
   0xa   :  { %71 = dma.hbm_to_vmem [thread:$0]  %s64_s12, 512, %s66_s13, [#allocation7], %s651_s25, %s651_s25, %s652_s26  }
   0xb   :  { %644 = dma.done.wait [#allocation4], 512  }
   0xc   :  { %645 = vsyncadd [#allocation4], 4294966784 }
   0xd   :  { %646 = dma.done.wait [#allocation7], 1024  }
   0xe   :  { %647 = vsyncadd [#allocation7], 4294966272  ;;  %vm100_vm0 = vcmask 64512   ;;  %v95_v0 = vld [vmem:[%s858_s3] sm:$0xff]  ;;  %v127_v2 = vld [vmem:[%s859_s4 + $0x18] sm:$0xff]  ;;  %vm91_vm1 = vcmask 261120  }
   0xf   :  { %v93_v1 = vld [vmem:[%s855_s0] sm:$0xff]  ;;  %119 = vmatpush.msra.mxu2 %v95_v0  ;;  %144 = vmatpush.msra.mxu1 %v127_v2  ;;  %v126_v3 = vld [vmem:[%s859_s4 + $0x10] sm:$0xff]  ;;  %v125_v4 = vld [vmem:[%s859_s4 + $0x8] sm:$0xff]  ;;  %s657_s8 = smov 96   ;;  %vm468_vm14 = vcmask 326656  }
  0x10   :  { %489 = vmatmul.msk.f32.vlgmr.msra.gmra.mxu2 %vm100_vm0, %v93_v1  ;;  %v90_v5 = vld [vmem:[%s856_s1] sm:$0xff]  ;;  %v196_v8 = vld [vmem:[%s860_s5 + $0x18] sm:$0xff]  ;;  %v195_v9 = vld [vmem:[%s860_s5 + $0x10] sm:$0xff]  ;;  %s658_s1 = smov [#allocation9]  }
  0x11   :  { %145 = vmatpush.msra.mxu1 %v126_v3  ;;  %92 = vst.msk [vmem:[#allocation2] sm:$0xff] %vm91_vm1, %v90_v5  ;;  %v124_v6 = vld [vmem:[%s859_s4] sm:$0xff]  ;;  %212 = vmatpush.msrb.mxu2 %v196_v8  ;;  %v194_v10 = vld [vmem:[%s860_s5 + $0x8] sm:$0xff]  ;;  %v252_v41 = vld [vmem:[#allocation6 + $0x10] sm:$0xff]  ;;  %s476_s28 = sshll.u32 %s658_s1, 4  ;;  %s477_s28 = int_to_ptr.vmem [resolvable:$true] %s476_s28 }
  0x12   :  { %v521_v11 = vld [vmem:[%s861_s6] ss:$0 sm:$0xff]  ;;  %s656_s6 = smov 32   ;;  %v251_v43 = vld [vmem:[#allocation6 + $0x8] sm:$0xff]  ;;  %v250_v44 = vld [vmem:[#allocation6] sm:$0xff] }
  0x13   :  { %146 = vmatpush.msra.mxu1 %v125_v4  ;;  %213 = vmatpush.msrb.mxu2 %v195_v9  ;;  %v193_v12 = vld [vmem:[%s860_s5] sm:$0xff]  ;;  %s655_s5 = smov 64   ;;  %v772_v45 = vld [vmem:[%s857_s2 + $0x18] sm:$0xff]  ;;  %v308_v51 = vld [vmem:[#allocation3 + $0x8] sm:$0xff] }
  0x14   :  { %v253_v40 = vld [vmem:[#allocation6 + $0x18] sm:$0xff]  ;;  %v309_v49 = vld [vmem:[#allocation3 + $0x10] sm:$0xff]  ;;  %v307_v52 = vld [vmem:[#allocation3] sm:$0xff] }
  0x15   :  { %147 = vmatpush.msra.mxu1 %v124_v6  ;;  %214 = vmatpush.msrb.mxu2 %v194_v10  ;;  %v777_v46 = vld [vmem:[%s857_s2] sm:$0xff]  ;;  %v791_v54 = vld [vmem:[%s857_s2 + $0x8] sm:$0xff]  ;;  %v808_v5 = vld [vmem:[%s857_s2 + $0x10] sm:$0xff] }
  0x16   :  { %505 = vmatpush.msra.mxu3 %v253_v40  ;;  %284 = vmatpush.msra.mxu0 %v253_v40  ;;  %v310_v48 = vld [vmem:[#allocation3 + $0x18] sm:$0xff]  ;;  %v800_v61 = vld [vmem:[%s857_s2 + $0x28] sm:$0xff] }
  0x17   :  { %215 = vmatpush.msrb.mxu2 %v193_v12  ;;  %504 = vmatpush.msrb.mxu1 %v253_v40  ;;  %v786_v53 = vld [vmem:[%s857_s2 + $0x20] sm:$0xff] }
  0x18   :  { %v94_v7 = vld [vmem:[#allocation2] sm:$0xff]  ;;  %507 = vmatpush.msra.mxu3 %v252_v41  ;;  %285 = vmatpush.msra.mxu0 %v252_v41 }
  0x19   :  { %490 = vmatmul.msk.f32.vlgmr.msra.gmra.mxu1 %vm91_vm1, %v94_v7 }
  0x1a   :  { %506 = vmatpush.msrb.mxu1 %v252_v41  ;;  %509 = vmatpush.msra.mxu3 %v251_v43 }
  0x1b   :  { %286 = vmatpush.msra.mxu0 %v251_v43 }
  0x1c   :  { %508 = vmatpush.msrb.mxu1 %v251_v43  ;;  %511 = vmatpush.msra.mxu3 %v250_v44 }
  0x1d   :  { %287 = vmatpush.msra.mxu0 %v250_v44  ;;  %498 = vmatmul.msk.f32.vlgmr.msra.gmra.mxu3 %vm91_vm1, %v772_v45 }
  0x1e   :  { %495 = vmatmul.msk.f32.vlgmr.msra.gmra.mxu0 %vm91_vm1, %v777_v46  ;;  %510 = vmatpush.msrb.mxu1 %v250_v44 }
  0x1f   :  { %325 = vmatpush.msrb.mxu0 %v310_v48 }
  0x21   :  { %326 = vmatpush.msrb.mxu0 %v309_v49  ;;  %497 = vmatmul.msk.f32.vlgmr.msrb.gmra.mxu1 %vm91_vm1, %v808_v5 }
  0x23   :  { %327 = vmatpush.msrb.mxu0 %v308_v51 }
  0x25   :  { %328 = vmatpush.msrb.mxu0 %v307_v52  ;;  %499 = vmatmul.msk.f32.gmra.mxu3 %vm91_vm1, %v786_v53 }
  0x26   :  { %496 = vmatmul.msk.f32.gmra.mxu0 %vm91_vm1, %v791_v54 }
  0x2d   :  { %500 = vmatmul.msk.f32.gmra.mxu3 %vm91_vm1, %v800_v61 }
  0x93   :  { %v121_v13 = vpop.f32.mrf.mxu2 }
  0x94   :  { %v122_v14 = vadd.f32 %v521_v11, %v121_v13 }
  0x96   :  { %v149_v15 = vpop.f32.mrf.mxu1 }
  0x97   :  { %v152_v16 = vadd.f32 %v149_v15, %v122_v14 }
  0x99   :  { %v491_v17 = vmul.f32 -1.442695, %v152_v16  ;;  %v172_v35 = vadd.f32 1.0, %v152_v16 }
  0x9b   :  { %522 = vpow2.f32 %v491_v17  ;;  %v492_v36 = vmul.f32 -1.442695, %v172_v35 }
  0x9e   :  { %v295_v11 = vpop.f32.mrf.mxu1 }
  0xa0   :  { %v298_v8 = vpop.f32.mrf.mxu3 }
  0xa1   :  { %v523_v18 = vpop.eup %522 }
  0xa2   :  { %v156_v19 = vadd.f32 1.0, %v523_v18 }
  0xa4   :  { %524 = vrcp.f32 %v156_v19  ;;  %v168_v23 = vand.u32 2147483648, %v156_v19  ;;  %v166_v25 = vand.u32 2147483647, %v156_v19  ;;  %vm162_vm3 = vweird.f32 %v156_v19 }
  0xa6   :  { %v169_v27 = vor.u32 1.1754944e-38, %v168_v23  ;;  %vm167_vm5 = vcmp.eq.f32.partialorder %v166_v25, 8.507059e+37  ;;  %v404_v23 = vld [vmem:[#allocation8 + $0x18] sm:$0xff] }
  0xa7   :  { %420 = vmatpush.msra.mxu1 %v404_v23 }
  0xa8   :  { %v301_v10 = vpop.f32.mrf.mxu3 }
  0xaa   :  { %v525_v20 = vpop.eup %524 }
  0xab   :  { %v158_v21 = vmul.f32 %v525_v20, %v156_v19  ;;  %vm163_vm2 = vweird.f32 %v525_v20 }
  0xac   :  { %vm164_vm4 = vmor %vm162_vm3, %vm163_vm2 }
  0xad   :  { %v159_v22 = vsub.f32 1.0, %v158_v21 }
  0xaf   :  { %v160_v24 = vmul.f32 %v525_v20, %v159_v22 }
  0xb0   :  { %v304_v19 = vpop.f32.mrf.mxu3 }
  0xb1   :  { %v161_v26 = vadd.f32 %v525_v20, %v160_v24  ;;  %v403_v24 = vld [vmem:[#allocation8 + $0x10] sm:$0xff] }
  0xb2   :  { %421 = vmatpush.msra.mxu1 %v403_v24 }
  0xb3   :  { %v165_v28 = vsel %vm164_vm4, %v525_v20, %v161_v26 }
  0xb4   :  { %v170_v29 = vsel %vm167_vm5, %v169_v27, %v165_v28  ;;  %v402_v28 = vld [vmem:[#allocation8 + $0x8] sm:$0xff] }
  0xb5   :  { %v192_v30 = vmul.f32 %v170_v29, %v94_v7  ;;  %422 = vmatpush.msra.mxu1 %v402_v28 }
  0xb7   :  { %493 = vmatmul.msk.f32.vlgmr.msrb.gmra.mxu2 %vm91_vm1, %v192_v30 }
 0x13a   :  { %v217_v31 = vpop.f32.mrf.mxu2 }
 0x13b   :  { %221 = vrot.lane.b32.xlu0 %v217_v31, %s655_s5  ;;  %v401_v31 = vld [vmem:[#allocation8] sm:$0xff] }
 0x13c   :  { %423 = vmatpush.msra.mxu1 %v401_v31 }
 0x143   :  { %226 = vrot.lane.b32.xlu0 %v94_v7, %s656_s6  ;;  %v289_v7 = vpop.f32.mrf.mxu0 }
 0x14b   :  { %v292_v9 = vpop.f32.mrf.mxu0 }
 0x1ad   :  { %v222_v32 = vpop.permute.xlu0 %221 }
 0x1ae   :  { %v224_v33 = vadd.f32 %v222_v32, %v122_v14 }
 0x1b0   :  { %526 = vtanh.f32 %v224_v33 }
 0x1b1   :  { %528 = vpow2.f32 %v492_v36 }
 0x1b5   :  { %v227_v62 = vpop.permute.xlu0 %226 }
 0x1b6   :  { %v527_v34 = vpop.eup %526 }
 0x1b7   :  { %232 = vrot.lane.b32.xlu1 %v527_v34, %s657_s8  ;;  %v529_v37 = vpop.eup %528 }
 0x1b8   :  { %v176_v38 = vadd.f32 1.0, %v529_v37 }
 0x1ba   :  { %530 = vrcp.f32 %v176_v38  ;;  %v188_v56 = vand.u32 2147483648, %v176_v38  ;;  %vm182_vm7 = vweird.f32 %v176_v38  ;;  %v186_v57 = vand.u32 2147483647, %v176_v38 }
 0x1bc   :  { %v189_v59 = vor.u32 1.1754944e-38, %v188_v56  ;;  %vm187_vm9 = vcmp.eq.f32.partialorder %v186_v57, 8.507059e+37 }
 0x1c0   :  { %v531_v39 = vpop.eup %530 }
 0x1c1   :  { %v178_v42 = vmul.f32 %v531_v39, %v176_v38  ;;  %vm183_vm6 = vweird.f32 %v531_v39 }
 0x1c2   :  { %vm184_vm8 = vmor %vm182_vm7, %vm183_vm6 }
 0x1c3   :  { %v179_v47 = vsub.f32 1.0, %v178_v42 }
 0x1c5   :  { %v180_v50 = vmul.f32 %v531_v39, %v179_v47 }
 0x1c7   :  { %v181_v55 = vadd.f32 %v531_v39, %v180_v50 }
 0x1c9   :  { %v185_v58 = vsel %vm184_vm8, %v531_v39, %v181_v55 }
 0x1ca   :  { %v190_v60 = vsel %vm187_vm9, %v189_v59, %v185_v58 }
 0x1cb   :  { %v230_v63 = vsub.f32 1.0, %v190_v60  ;;  %v229_v1 = vmul.f32 %v227_v62, %v190_v60 }
 0x229   :  { %v233_v0 = vpop.permute.xlu1 %232 }
 0x22a   :  { %v235_v2 = vmul.f32 %v233_v0, %v230_v63 }
 0x22c   :  { %v236_v3 = vadd.f32 %v235_v2, %v229_v1 }
 0x22e   :  { %v494_v4 = vclamps-f32 %v236_v3, 5.0 }
 0x230   :  { %240 = vrot.lane.b32.xlu1 %v494_v4, %s657_s8 }
 0x2a2   :  { %v812_v6 = vpop.permute.xlu1 %240 }
 0x2a3   :  { %243 = vst.msk [vmem:[#allocation2] sm:$0xff] %vm91_vm1, %v812_v6  ;;  %501 = vmatmul.msk.f32.vlgmr.msrb.gmra.mxu0 %vm91_vm1, %v812_v6 }
 0x320   :  { %v818_v12 = vpop.f32.mrf.mxu0 }
 0x321   :  { %v333_v13 = vadd.f32 %v818_v12, %v289_v7  ;;  %v335_v14 = vadd.f32 %v818_v12, %v292_v9  ;;  %v337_v15 = vadd.f32 %v818_v12, %v295_v11  ;;  %v339_v18 = vadd.f32 %v818_v12, %v298_v8 }
 0x322   :  { %v341_v21 = vadd.f32 %v818_v12, %v301_v10  ;;  %v343_v26 = vadd.f32 %v818_v12, %v304_v19 }
 0x323   :  { %v334_v16 = vmax.f32 %v333_v13, 0.0  ;;  %v336_v17 = vmax.f32 %v335_v14, 0.0  ;;  %v338_v20 = vmax.f32 %v337_v15, 0.0  ;;  %v340_v25 = vmax.f32 %v339_v18, 0.0 }
 0x324   :  { %v342_v29 = vmax.f32 %v341_v21, 0.0  ;;  %v344_v32 = vmax.f32 %v343_v26, 0.0  ;;  %v435_v21 = vld [vmem:[%s865_s10 + $0x8] sm:$0xff] }
 0x325   :  { %v345_v22 = vmax.f32 %v334_v16, %v336_v17 }
 0x327   :  { %v346_v27 = vmax.f32 %v345_v22, %v338_v20  ;;  %v434_v22 = vld [vmem:[%s865_s10] sm:$0xff] }
 0x329   :  { %v347_v30 = vmax.f32 %v346_v27, %v340_v25 }
 0x32b   :  { %v348_v33 = vmax.f32 %v347_v30, %v342_v29 }
 0x32d   :  { %v349_v34 = vmax.f32 %v348_v33, %v344_v32 }
 0x32f   :  { %v350_v35 = vsub.f32 %v334_v16, %v349_v34  ;;  %v356_v36 = vsub.f32 %v336_v17, %v349_v34  ;;  %v362_v37 = vsub.f32 %v338_v20, %v349_v34  ;;  %v368_v38 = vsub.f32 %v340_v25, %v349_v34  ;;  %v437_v20 = vld [vmem:[%s865_s10 + $0x18] sm:$0xff] }
 0x330   :  { %v374_v42 = vsub.f32 %v342_v29, %v349_v34  ;;  %v380_v44 = vsub.f32 %v344_v32, %v349_v34  ;;  %455 = vmatpush.msra.mxu2 %v437_v20 }
 0x331   :  { %v351_v39 = vmul.f32 1.442695, %v350_v35  ;;  %v357_v40 = vmul.f32 1.442695, %v356_v36  ;;  %v363_v41 = vmul.f32 1.442695, %v362_v37 }
 0x332   :  { %v369_v43 = vmul.f32 1.442695, %v368_v38  ;;  %v375_v47 = vmul.f32 1.442695, %v374_v42  ;;  %v381_v48 = vmul.f32 1.442695, %v380_v44 }
 0x333   :  { %532 = vpow2.f32 %v351_v39 }
 0x334   :  { %534 = vpow2.f32 %v357_v40 }
 0x335   :  { %536 = vpow2.f32 %v363_v41 }
 0x336   :  { %538 = vpow2.f32 %v369_v43 }
 0x337   :  { %540 = vpow2.f32 %v375_v47 }
 0x338   :  { %542 = vpow2.f32 %v381_v48 }
 0x339   :  { %v533_v49 = vpop.eup %532 }
 0x33a   :  { %v535_v50 = vpop.eup %534  ;;  %v354_v59 = vmul.f32 %v533_v49, %v777_v46 }
 0x33b   :  { %v359_v51 = vadd.f32 %v535_v50, %v533_v49  ;;  %v537_v52 = vpop.eup %536  ;;  %v360_v60 = vmul.f32 %v535_v50, %v791_v54 }
 0x33c   :  { %v539_v56 = vpop.eup %538  ;;  %v366_v2 = vmul.f32 %v537_v52, %v808_v5 }
 0x33d   :  { %v365_v55 = vadd.f32 %v537_v52, %v359_v51  ;;  %v541_v58 = vpop.eup %540  ;;  %v361_v1 = vadd.f32 %v360_v60, %v354_v59  ;;  %v372_v4 = vmul.f32 %v539_v56, %v772_v45 }
 0x33e   :  { %v543_v63 = vpop.eup %542  ;;  %v378_v10 = vmul.f32 %v541_v58, %v786_v53 }
 0x33f   :  { %v371_v57 = vadd.f32 %v539_v56, %v365_v55  ;;  %v367_v3 = vadd.f32 %v366_v2, %v361_v1  ;;  %v384_v15 = vmul.f32 %v543_v63, %v800_v61  ;;  %v436_v61 = vld [vmem:[%s865_s10 + $0x10] sm:$0xff]  ;;  %s478_s10 = sshll.u32 %s866_s11, 4  ;;  %s479_s10 = int_to_ptr.hbm [resolvable:$true] %s478_s10 }
 0x340   :  { %456 = vmatpush.msra.mxu2 %v436_v61 }
 0x341   :  { %v377_v62 = vadd.f32 %v541_v58, %v371_v57  ;;  %v373_v8 = vadd.f32 %v372_v4, %v367_v3 }
 0x342   :  { %457 = vmatpush.msra.mxu2 %v435_v21 }
 0x343   :  { %v383_v0 = vadd.f32 %v543_v63, %v377_v62  ;;  %v379_v46 = vadd.f32 %v378_v10, %v373_v8 }
 0x344   :  { %458 = vmatpush.msra.mxu2 %v434_v22 }
 0x345   :  { %544 = vrcp.f32 %v383_v0  ;;  %v397_v13 = vand.u32 2147483648, %v383_v0  ;;  %v395_v54 = vand.u32 2147483647, %v383_v0  ;;  %vm391_vm11 = vweird.f32 %v383_v0 }
 0x346   :  { %v385_v17 = vadd.f32 %v384_v15, %v379_v46 }
 0x347   :  { %v398_v5 = vor.u32 1.1754944e-38, %v397_v13  ;;  %vm396_vm13 = vcmp.eq.f32.partialorder %v395_v54, 8.507059e+37 }
 0x34b   :  { %v545_v7 = vpop.eup %544 }
 0x34c   :  { %v387_v9 = vmul.f32 %v545_v7, %v383_v0  ;;  %vm392_vm10 = vweird.f32 %v545_v7 }
 0x34d   :  { %vm393_vm12 = vmor %vm391_vm11, %vm392_vm10 }
 0x34e   :  { %v388_v11 = vsub.f32 1.0, %v387_v9 }
 0x350   :  { %v389_v14 = vmul.f32 %v545_v7, %v388_v11 }
 0x352   :  { %v390_v16 = vadd.f32 %v545_v7, %v389_v14 }
 0x354   :  { %v394_v18 = vsel %vm393_vm12, %v545_v7, %v390_v16 }
 0x355   :  { %v399_v45 = vsel %vm396_vm13, %v398_v5, %v394_v18 }
 0x356   :  { %v400_v19 = vmul.f32 %v399_v45, %v385_v17 }
 0x358   :  { %502 = vmatmul.msk.f32.vlgmr.msra.gmra.mxu1 %vm91_vm1, %v400_v19 }
 0x3d5   :  { %v425_v53 = vpop.f32.mrf.mxu1 }
 0x3d6   :  { %429 = vrot.lane.b32.xlu2 %v425_v53, %s656_s6 }
 0x430   :  { %v430_v23 = vpop.permute.xlu2 %429 }
 0x431   :  { %v432_v24 = vadd.f32 %v430_v23, %v818_v12 }
 0x433   :  { %546 = vtanh.f32 %v432_v24 }
 0x439   :  { %v547_v25 = vpop.eup %546 }
 0x43a   :  { %439 = vrot.lane.b32.xlu2 %v547_v25, %s657_s8 }
 0x494   :  { %v440_v26 = vpop.permute.xlu2 %439 }
 0x495   :  { %503 = vmatmul.msk.f32.vlgmr.msra.gmra.mxu2 %vm91_vm1, %v440_v26 }
 0x518   :  { %v460_v27 = vpop.f32.mrf.mxu2 }
 0x519   :  { %464 = vrot.lane.b32.xlu0 %v460_v27, %s656_s6 }
 0x58b   :  { %v465_v28 = vpop.permute.xlu0 %464 }
 0x58c   :  { %v467_v12 = vsel %vm91_vm1, %v812_v6, %v465_v28 }
 0x58d   :  { %v469_v29 = vsel %vm468_vm14, %v467_v12, 0.0 }
 0x58e   :  { %470 = vst [vmem:[#allocation9] sm:$0xff] %v469_v29 }
 0x58f   :  { %481 = dma.vmem_to_hbm [thread:$0]  %s477_s28, 128, %s479_s10, [#allocation5]  }
 0x590   :  { %648 = dma.done.wait [#allocation5], 128  }
 0x591   :  { %649 = vsyncadd [#allocation5], 4294967168 }
 0x592   :  { %486 = vsyncpa [#allocation4], 1 }
 0x593   :  { %487 = vsyncpa [#allocation7], 1 }
 0x594   :  { %488 = vsyncpa [#allocation5], 1 }

</bundles_post_ra>
